<compile_context>
chip_gen: v7x
topology: tpu7x:2x2x1
jax: 0.10.0
libtpu: 0.0.40
codegen_flags: <defaults>
</compile_context>

<pallas_src>
from functools import partial

import jax
import jax.numpy as jnp
from jax import lax
from jax.experimental import pallas as pl
from jax.experimental.pallas import tpu as pltpu


def bottleneck_kernel(xc_ref, w1_ref, b1_ref, w2_ref, b2_ref, mask_ref, o_ref,
                      *, d, Wp, q0, qm, Lv, Lm):
    """One batch element, everything in (channels, flat-canvas) layout.

    xc_ref  : (Cin, L)        zero-padded (pad=d+1) input canvas, flattened
    w1_ref  : (3, 3, Cmid, Cin)   conv1 weights, tap-major, (out, in) per tap
    b1_ref  : (Cmid, 1)
    w2_ref  : (3, 3, Cout, Cmid)  conv2 weights
    b2_ref  : (Cout, 1)
    mask_ref: (1, Lm)         1.0 on interior pixels of the extended window
    o_ref   : (Cout, Lv)      valid-window output (lane-dense store)
    """
    xc = xc_ref[...].astype(jnp.float32)                 # (Cin, L)
    cmid = w1_ref.shape[2]
    cout = w2_ref.shape[2]

    # ---- conv1: 3x3, dilation d, over the extended window (Lm lanes) ----
    acc1 = jnp.zeros((cmid, Lm), jnp.float32)
    for ky in range(3):
        for kx in range(3):
            s = qm + (ky - 1) * d * Wp + (kx - 1) * d    # static lane offset
            tap = xc[:, s:s + Lm]                        # (Cin, Lm)
            acc1 = acc1 + jnp.dot(w1_ref[ky, kx], tap,
                                  preferred_element_type=jnp.float32)
    # tanh + bias; mask implements nn.ZeroPad2d(1) of the mid activation
    mid = jnp.tanh(acc1 + b1_ref[...]) * mask_ref[...]   # (Cmid, Lm)

    # ---- conv2: 3x3, dilation 1, over the valid window (Lv lanes) ----
    acc2 = jnp.zeros((cout, Lv), jnp.float32)
    base = Wp + 1                                        # valid-window origin
    for ky in range(3):
        for kx in range(3):
            s = base + (ky - 1) * Wp + (kx - 1)
            tap = mid[:, s:s + Lv]                       # (Cmid, Lv)
            acc2 = acc2 + jnp.dot(w2_ref[ky, kx], tap,
                                  preferred_element_type=jnp.float32)

    res = xc[:, q0:q0 + Lv]                              # residual, same anchors
    out = jnp.tanh(acc2 + b2_ref[...] + res)             # bias + residual + tanh
    o_ref[...] = out.astype(o_ref.dtype)                 # lane-dense store


def bottleneck_block(x, w1, b1, w2, b2, dilation=1):
    """x: (N, Cin, H, W) NCHW; w1: (Cmid, Cin, 3, 3); w2: (Cout, Cmid, 3, 3)."""
    N, Cin, H, W = x.shape
    Cmid = w1.shape[0]
    Cout = w2.shape[0]
    assert Cout == Cin, "residual add requires out_channels == in_channels"
    d = dilation

    # Canvas geometry: pad by p = d+1 so conv1 can be evaluated (as junk, later
    # masked to zero) one pixel beyond the image, which is exactly the support
    # conv2 needs after its ZeroPad2d(1).
    p = d + 1
    Hp, Wp = H + 2 * p, W + 2 * p
    L = Hp * Wp                       # flat canvas length
    q0 = p * Wp + p                   # flat index of pixel (0, 0)
    Lv = (H - 1) * Wp + W             # valid output window length
    qm = q0 - (Wp + 1)                # extended (mid) window origin
    Lm = Lv + 2 * (Wp + 1)            # extended window length

    # Zero-padded, spatially-flattened canvas (single input array; the kernel
    # also reads the residual from it).
    xc = jnp.pad(x, ((0, 0), (0, 0), (p, p), (p, p))).reshape(N, Cin, L)

    # Tap-major weights, (out, in) per tap, so the kernel does W_tap @ X.
    w1t = jnp.transpose(w1, (2, 3, 0, 1))     # (3, 3, Cmid, Cin)
    w2t = jnp.transpose(w2, (2, 3, 0, 1))     # (3, 3, Cout, Cmid)

    # Interior-pixel mask over the extended window (ZeroPad2d(1) of mid).
    pos = qm + jnp.arange(Lm)
    yy, xx = pos // Wp, pos % Wp
    mask = (((yy >= p) & (yy < p + H) & (xx >= p) & (xx < p + W))
            .astype(jnp.float32).reshape(1, Lm))

    kernel = partial(bottleneck_kernel, d=d, Wp=Wp, q0=q0, qm=qm, Lv=Lv, Lm=Lm)

    flops = 2 * 9 * N * (Cin * Cmid * Lm + Cmid * Cout * Lv)
    transcendentals = N * (Cmid * Lm + Cout * Lv)
    bytes_accessed = 4 * (N * Cin * L + N * Cout * Lv + w1.size + w2.size
                          + b1.size + b2.size + Lm)

    out_win = pl.pallas_call(
        kernel,
        out_shape=jax.ShapeDtypeStruct((N, Cout, Lv), x.dtype),
        grid_spec=pltpu.PrefetchScalarGridSpec(
            num_scalar_prefetch=0,
            grid=(N,),
            in_specs=[
                pl.BlockSpec((None, Cin, L), lambda n: (n, 0, 0)),
                pl.BlockSpec((3, 3, Cmid, Cin), lambda n: (0, 0, 0, 0)),
                pl.BlockSpec((Cmid, 1), lambda n: (0, 0)),
                pl.BlockSpec((3, 3, Cout, Cmid), lambda n: (0, 0, 0, 0)),
                pl.BlockSpec((Cout, 1), lambda n: (0, 0)),
                pl.BlockSpec((1, Lm), lambda n: (0, 0)),
            ],
            out_specs=pl.BlockSpec((None, Cout, Lv), lambda n: (n, 0, 0)),
        ),
        compiler_params=pltpu.CompilerParams(
            dimension_semantics=("parallel",)),
        cost_estimate=pl.CostEstimate(flops=flops,
                                      transcendentals=transcendentals,
                                      bytes_accessed=bytes_accessed),
    )(xc, w1t, b1.reshape(Cmid, 1), w2t, b2.reshape(Cout, 1), mask)

    # Layout plumbing in the wrapper: window index j = oy*Wp + ox -> (oy, ox).
    out = jnp.pad(out_win, ((0, 0), (0, 0), (0, H * Wp - Lv)))
    out = out.reshape(N, Cout, H, Wp)[..., :W]
    return out


def reference(x, w1, b1, w2, b2, dilation=1):
    """Pure-JAX reference of the PyTorch forward (NCHW / OIHW)."""
    d = dilation
    dn = ("NCHW", "OIHW", "NCHW")
    h = lax.conv_general_dilated(
        x, w1, window_strides=(1, 1), padding=[(d, d), (d, d)],
        rhs_dilation=(d, d), dimension_numbers=dn) + b1[None, :, None, None]
    h = jnp.tanh(h)
    h = lax.conv_general_dilated(
        h, w2, window_strides=(1, 1), padding=[(1, 1), (1, 1)],
        dimension_numbers=dn) + b2[None, :, None, None]
    return jnp.tanh(h + x)


if __name__ == "__main__":
    key = jax.random.PRNGKey(0)
    N, H, W = 2, 16, 16
    Cin = Cout = 4          # in_channels == out_channels (downsample=None)
    Cmid = 2 * Cout         # out_channels * 2 for the first conv
    dilation = 1

    k1, k2, k3, k4, k5 = jax.random.split(key, 5)
    x = jax.random.normal(k1, (N, Cin, H, W), jnp.float32)
    # deterministic synthetic parameters (roughly kaiming-scale), PyTorch OIHW
    w1 = jax.random.normal(k2, (Cmid, Cin, 3, 3), jnp.float32) / jnp.sqrt(9.0 * Cin)
    b1 = jax.random.normal(k3, (Cmid,), jnp.float32) * 0.05
    w2 = jax.random.normal(k4, (Cout, Cmid, 3, 3), jnp.float32) / jnp.sqrt(9.0 * Cmid)
    b2 = jax.random.normal(k5, (Cout,), jnp.float32) * 0.05

    out = jax.block_until_ready(bottleneck_block(x, w1, b1, w2, b2, dilation))

    ref = reference(x, w1, b1, w2, b2, dilation)
    assert out.shape == (N, Cout, H, W), out.shape
    assert jnp.allclose(out, ref, atol=2e-4, rtol=2e-4), \
        float(jnp.max(jnp.abs(out - ref)))
    print("KERNEL_OK")
</pallas_src>

<mosaic_0001>
module attributes {stable_mosaic.version = 11 : i64} {
  func.func @bottleneck_kernel(%arg0: i32, %arg1: memref<1x4x400xf32, #tpu.memory_space<vmem>>, %arg2: memref<3x3x8x4xf32, #tpu.memory_space<vmem>>, %arg3: memref<8x1xf32, #tpu.memory_space<vmem>>, %arg4: memref<3x3x4x8xf32, #tpu.memory_space<vmem>>, %arg5: memref<4x1xf32, #tpu.memory_space<vmem>>, %arg6: memref<1x358xf32, #tpu.memory_space<vmem>>, %arg7: memref<1x4x316xf32, #tpu.memory_space<vmem>>) attributes {dimension_semantics = [#tpu.dimension_semantics<parallel>], iteration_bounds = array<i64: 2>, scalar_prefetch = 0 : i64, scratch_operands = 0 : i64, tpu.core_type = #tpu.core_type<tc>, window_params = [{transform_indices = @transform_0, window_bounds = array<i64: 1, 4, 400>}, {pipeline_mode = #tpu.pipeline_mode<synchronous>, transform_indices = @transform_1, window_bounds = array<i64: 3, 3, 8, 4>}, {pipeline_mode = #tpu.pipeline_mode<synchronous>, transform_indices = @transform_2, window_bounds = array<i64: 8, 1>}, {pipeline_mode = #tpu.pipeline_mode<synchronous>, transform_indices = @transform_3, window_bounds = array<i64: 3, 3, 4, 8>}, {pipeline_mode = #tpu.pipeline_mode<synchronous>, transform_indices = @transform_4, window_bounds = array<i64: 4, 1>}, {pipeline_mode = #tpu.pipeline_mode<synchronous>, transform_indices = @transform_5, window_bounds = array<i64: 1, 358>}, {transform_indices = @transform_6, window_bounds = array<i64: 1, 4, 316>}]} {
    %c0 = arith.constant 0 : index
    %c0_0 = arith.constant 0 : index
    %c0_1 = arith.constant 0 : index
    %0 = vector.load %arg1[%c0, %c0_0, %c0_1] : memref<1x4x400xf32, #tpu.memory_space<vmem>>, vector<1x4x400xf32>
    %1 = vector.shape_cast %0 : vector<1x4x400xf32> to vector<4x400xf32>
    %cst = arith.constant 0.000000e+00 : f32
    %2 = vector.broadcast %cst : f32 to vector<8x358xf32>
    %3 = vector.extract_strided_slice %1 {offsets = [0, 0], sizes = [4, 358], strides = [1, 1]} : vector<4x400xf32> to vector<4x358xf32>
    %c0_2 = arith.constant 0 : index
    %c0_3 = arith.constant 0 : index
    %c0_4 = arith.constant 0 : index
    %c0_5 = arith.constant 0 : index
    %4 = vector.load %arg2[%c0_2, %c0_3, %c0_4, %c0_5] : memref<3x3x8x4xf32, #tpu.memory_space<vmem>>, vector<1x1x8x4xf32>
    %5 = vector.shape_cast %4 : vector<1x1x8x4xf32> to vector<8x4xf32>
    %cst_6 = arith.constant dense<0.000000e+00> : vector<8x358xf32>
    %6 = tpu.matmul %5, %3, %cst_6 {dimension_numbers = #tpu.dot_dimension_numbers<[1], [0], [0], [1], [0, 0, 1, 1], [], []>} : vector<8x4xf32>, vector<4x358xf32>, vector<8x358xf32> -> vector<8x358xf32>
    %7 = arith.addf %2, %6 : vector<8x358xf32>
    %8 = vector.extract_strided_slice %1 {offsets = [0, 1], sizes = [4, 358], strides = [1, 1]} : vector<4x400xf32> to vector<4x358xf32>
    %c0_7 = arith.constant 0 : index
    %c1 = arith.constant 1 : index
    %c0_8 = arith.constant 0 : index
    %c0_9 = arith.constant 0 : index
    %9 = vector.load %arg2[%c0_7, %c1, %c0_8, %c0_9] : memref<3x3x8x4xf32, #tpu.memory_space<vmem>>, vector<1x1x8x4xf32>
    %10 = vector.shape_cast %9 : vector<1x1x8x4xf32> to vector<8x4xf32>
    %cst_10 = arith.constant dense<0.000000e+00> : vector<8x358xf32>
    %11 = tpu.matmul %10, %8, %cst_10 {dimension_numbers = #tpu.dot_dimension_numbers<[1], [0], [0], [1], [0, 0, 1, 1], [], []>} : vector<8x4xf32>, vector<4x358xf32>, vector<8x358xf32> -> vector<8x358xf32>
    %12 = arith.addf %7, %11 : vector<8x358xf32>
    %13 = vector.extract_strided_slice %1 {offsets = [0, 2], sizes = [4, 358], strides = [1, 1]} : vector<4x400xf32> to vector<4x358xf32>
    %c0_11 = arith.constant 0 : index
    %c2 = arith.constant 2 : index
    %c0_12 = arith.constant 0 : index
    %c0_13 = arith.constant 0 : index
    %14 = vector.load %arg2[%c0_11, %c2, %c0_12, %c0_13] : memref<3x3x8x4xf32, #tpu.memory_space<vmem>>, vector<1x1x8x4xf32>
    %15 = vector.shape_cast %14 : vector<1x1x8x4xf32> to vector<8x4xf32>
    %cst_14 = arith.constant dense<0.000000e+00> : vector<8x358xf32>
    %16 = tpu.matmul %15, %13, %cst_14 {dimension_numbers = #tpu.dot_dimension_numbers<[1], [0], [0], [1], [0, 0, 1, 1], [], []>} : vector<8x4xf32>, vector<4x358xf32>, vector<8x358xf32> -> vector<8x358xf32>
    %17 = arith.addf %12, %16 : vector<8x358xf32>
    %18 = vector.extract_strided_slice %1 {offsets = [0, 20], sizes = [4, 358], strides = [1, 1]} : vector<4x400xf32> to vector<4x358xf32>
    %c1_15 = arith.constant 1 : index
    %c0_16 = arith.constant 0 : index
    %c0_17 = arith.constant 0 : index
    %c0_18 = arith.constant 0 : index
    %19 = vector.load %arg2[%c1_15, %c0_16, %c0_17, %c0_18] : memref<3x3x8x4xf32, #tpu.memory_space<vmem>>, vector<1x1x8x4xf32>
    %20 = vector.shape_cast %19 : vector<1x1x8x4xf32> to vector<8x4xf32>
    %cst_19 = arith.constant dense<0.000000e+00> : vector<8x358xf32>
    %21 = tpu.matmul %20, %18, %cst_19 {dimension_numbers = #tpu.dot_dimension_numbers<[1], [0], [0], [1], [0, 0, 1, 1], [], []>} : vector<8x4xf32>, vector<4x358xf32>, vector<8x358xf32> -> vector<8x358xf32>
    %22 = arith.addf %17, %21 : vector<8x358xf32>
    %23 = vector.extract_strided_slice %1 {offsets = [0, 21], sizes = [4, 358], strides = [1, 1]} : vector<4x400xf32> to vector<4x358xf32>
    %c1_20 = arith.constant 1 : index
    %c1_21 = arith.constant 1 : index
    %c0_22 = arith.constant 0 : index
    %c0_23 = arith.constant 0 : index
    %24 = vector.load %arg2[%c1_20, %c1_21, %c0_22, %c0_23] : memref<3x3x8x4xf32, #tpu.memory_space<vmem>>, vector<1x1x8x4xf32>
    %25 = vector.shape_cast %24 : vector<1x1x8x4xf32> to vector<8x4xf32>
    %cst_24 = arith.constant dense<0.000000e+00> : vector<8x358xf32>
    %26 = tpu.matmul %25, %23, %cst_24 {dimension_numbers = #tpu.dot_dimension_numbers<[1], [0], [0], [1], [0, 0, 1, 1], [], []>} : vector<8x4xf32>, vector<4x358xf32>, vector<8x358xf32> -> vector<8x358xf32>
    %27 = arith.addf %22, %26 : vector<8x358xf32>
    %28 = vector.extract_strided_slice %1 {offsets = [0, 22], sizes = [4, 358], strides = [1, 1]} : vector<4x400xf32> to vector<4x358xf32>
    %c1_25 = arith.constant 1 : index
    %c2_26 = arith.constant 2 : index
    %c0_27 = arith.constant 0 : index
    %c0_28 = arith.constant 0 : index
    %29 = vector.load %arg2[%c1_25, %c2_26, %c0_27, %c0_28] : memref<3x3x8x4xf32, #tpu.memory_space<vmem>>, vector<1x1x8x4xf32>
    %30 = vector.shape_cast %29 : vector<1x1x8x4xf32> to vector<8x4xf32>
    %cst_29 = arith.constant dense<0.000000e+00> : vector<8x358xf32>
    %31 = tpu.matmul %30, %28, %cst_29 {dimension_numbers = #tpu.dot_dimension_numbers<[1], [0], [0], [1], [0, 0, 1, 1], [], []>} : vector<8x4xf32>, vector<4x358xf32>, vector<8x358xf32> -> vector<8x358xf32>
    %32 = arith.addf %27, %31 : vector<8x358xf32>
    %33 = vector.extract_strided_slice %1 {offsets = [0, 40], sizes = [4, 358], strides = [1, 1]} : vector<4x400xf32> to vector<4x358xf32>
    %c2_30 = arith.constant 2 : index
    %c0_31 = arith.constant 0 : index
    %c0_32 = arith.constant 0 : index
    %c0_33 = arith.constant 0 : index
    %34 = vector.load %arg2[%c2_30, %c0_31, %c0_32, %c0_33] : memref<3x3x8x4xf32, #tpu.memory_space<vmem>>, vector<1x1x8x4xf32>
    %35 = vector.shape_cast %34 : vector<1x1x8x4xf32> to vector<8x4xf32>
    %cst_34 = arith.constant dense<0.000000e+00> : vector<8x358xf32>
    %36 = tpu.matmul %35, %33, %cst_34 {dimension_numbers = #tpu.dot_dimension_numbers<[1], [0], [0], [1], [0, 0, 1, 1], [], []>} : vector<8x4xf32>, vector<4x358xf32>, vector<8x358xf32> -> vector<8x358xf32>
    %37 = arith.addf %32, %36 : vector<8x358xf32>
    %38 = vector.extract_strided_slice %1 {offsets = [0, 41], sizes = [4, 358], strides = [1, 1]} : vector<4x400xf32> to vector<4x358xf32>
    %c2_35 = arith.constant 2 : index
    %c1_36 = arith.constant 1 : index
    %c0_37 = arith.constant 0 : index
    %c0_38 = arith.constant 0 : index
    %39 = vector.load %arg2[%c2_35, %c1_36, %c0_37, %c0_38] : memref<3x3x8x4xf32, #tpu.memory_space<vmem>>, vector<1x1x8x4xf32>
    %40 = vector.shape_cast %39 : vector<1x1x8x4xf32> to vector<8x4xf32>
    %cst_39 = arith.constant dense<0.000000e+00> : vector<8x358xf32>
    %41 = tpu.matmul %40, %38, %cst_39 {dimension_numbers = #tpu.dot_dimension_numbers<[1], [0], [0], [1], [0, 0, 1, 1], [], []>} : vector<8x4xf32>, vector<4x358xf32>, vector<8x358xf32> -> vector<8x358xf32>
    %42 = arith.addf %37, %41 : vector<8x358xf32>
    %43 = vector.extract_strided_slice %1 {offsets = [0, 42], sizes = [4, 358], strides = [1, 1]} : vector<4x400xf32> to vector<4x358xf32>
    %c2_40 = arith.constant 2 : index
    %c2_41 = arith.constant 2 : index
    %c0_42 = arith.constant 0 : index
    %c0_43 = arith.constant 0 : index
    %44 = vector.load %arg2[%c2_40, %c2_41, %c0_42, %c0_43] : memref<3x3x8x4xf32, #tpu.memory_space<vmem>>, vector<1x1x8x4xf32>
    %45 = vector.shape_cast %44 : vector<1x1x8x4xf32> to vector<8x4xf32>
    %cst_44 = arith.constant dense<0.000000e+00> : vector<8x358xf32>
    %46 = tpu.matmul %45, %43, %cst_44 {dimension_numbers = #tpu.dot_dimension_numbers<[1], [0], [0], [1], [0, 0, 1, 1], [], []>} : vector<8x4xf32>, vector<4x358xf32>, vector<8x358xf32> -> vector<8x358xf32>
    %47 = arith.addf %42, %46 : vector<8x358xf32>
    %c0_45 = arith.constant 0 : index
    %c0_46 = arith.constant 0 : index
    %48 = vector.load %arg3[%c0_45, %c0_46] : memref<8x1xf32, #tpu.memory_space<vmem>>, vector<8x1xf32>
    %49 = vector.broadcast %48 : vector<8x1xf32> to vector<8x358xf32>
    %50 = arith.addf %47, %49 : vector<8x358xf32>
    %51 = math.tanh %50 : vector<8x358xf32>
    %c0_47 = arith.constant 0 : index
    %c0_48 = arith.constant 0 : index
    %52 = vector.load %arg6[%c0_47, %c0_48] : memref<1x358xf32, #tpu.memory_space<vmem>>, vector<1x358xf32>
    %53 = vector.broadcast %52 : vector<1x358xf32> to vector<8x358xf32>
    %54 = arith.mulf %51, %53 : vector<8x358xf32>
    %cst_49 = arith.constant 0.000000e+00 : f32
    %55 = vector.broadcast %cst_49 : f32 to vector<4x316xf32>
    %56 = vector.extract_strided_slice %54 {offsets = [0, 0], sizes = [8, 316], strides = [1, 1]} : vector<8x358xf32> to vector<8x316xf32>
    %c0_50 = arith.constant 0 : index
    %c0_51 = arith.constant 0 : index
    %c0_52 = arith.constant 0 : index
    %c0_53 = arith.constant 0 : index
    %57 = vector.load %arg4[%c0_50, %c0_51, %c0_52, %c0_53] : memref<3x3x4x8xf32, #tpu.memory_space<vmem>>, vector<1x1x4x8xf32>
    %58 = vector.shape_cast %57 : vector<1x1x4x8xf32> to vector<4x8xf32>
    %cst_54 = arith.constant dense<0.000000e+00> : vector<4x316xf32>
    %59 = tpu.matmul %58, %56, %cst_54 {dimension_numbers = #tpu.dot_dimension_numbers<[1], [0], [0], [1], [0, 0, 1, 1], [], []>} : vector<4x8xf32>, vector<8x316xf32>, vector<4x316xf32> -> vector<4x316xf32>
    %60 = arith.addf %55, %59 : vector<4x316xf32>
    %61 = vector.extract_strided_slice %54 {offsets = [0, 1], sizes = [8, 316], strides = [1, 1]} : vector<8x358xf32> to vector<8x316xf32>
    %c0_55 = arith.constant 0 : index
    %c1_56 = arith.constant 1 : index
    %c0_57 = arith.constant 0 : index
    %c0_58 = arith.constant 0 : index
    %62 = vector.load %arg4[%c0_55, %c1_56, %c0_57, %c0_58] : memref<3x3x4x8xf32, #tpu.memory_space<vmem>>, vector<1x1x4x8xf32>
    %63 = vector.shape_cast %62 : vector<1x1x4x8xf32> to vector<4x8xf32>
    %cst_59 = arith.constant dense<0.000000e+00> : vector<4x316xf32>
    %64 = tpu.matmul %63, %61, %cst_59 {dimension_numbers = #tpu.dot_dimension_numbers<[1], [0], [0], [1], [0, 0, 1, 1], [], []>} : vector<4x8xf32>, vector<8x316xf32>, vector<4x316xf32> -> vector<4x316xf32>
    %65 = arith.addf %60, %64 : vector<4x316xf32>
    %66 = vector.extract_strided_slice %54 {offsets = [0, 2], sizes = [8, 316], strides = [1, 1]} : vector<8x358xf32> to vector<8x316xf32>
    %c0_60 = arith.constant 0 : index
    %c2_61 = arith.constant 2 : index
    %c0_62 = arith.constant 0 : index
    %c0_63 = arith.constant 0 : index
    %67 = vector.load %arg4[%c0_60, %c2_61, %c0_62, %c0_63] : memref<3x3x4x8xf32, #tpu.memory_space<vmem>>, vector<1x1x4x8xf32>
    %68 = vector.shape_cast %67 : vector<1x1x4x8xf32> to vector<4x8xf32>
    %cst_64 = arith.constant dense<0.000000e+00> : vector<4x316xf32>
    %69 = tpu.matmul %68, %66, %cst_64 {dimension_numbers = #tpu.dot_dimension_numbers<[1], [0], [0], [1], [0, 0, 1, 1], [], []>} : vector<4x8xf32>, vector<8x316xf32>, vector<4x316xf32> -> vector<4x316xf32>
    %70 = arith.addf %65, %69 : vector<4x316xf32>
    %71 = vector.extract_strided_slice %54 {offsets = [0, 20], sizes = [8, 316], strides = [1, 1]} : vector<8x358xf32> to vector<8x316xf32>
    %c1_65 = arith.constant 1 : index
    %c0_66 = arith.constant 0 : index
    %c0_67 = arith.constant 0 : index
    %c0_68 = arith.constant 0 : index
    %72 = vector.load %arg4[%c1_65, %c0_66, %c0_67, %c0_68] : memref<3x3x4x8xf32, #tpu.memory_space<vmem>>, vector<1x1x4x8xf32>
    %73 = vector.shape_cast %72 : vector<1x1x4x8xf32> to vector<4x8xf32>
    %cst_69 = arith.constant dense<0.000000e+00> : vector<4x316xf32>
    %74 = tpu.matmul %73, %71, %cst_69 {dimension_numbers = #tpu.dot_dimension_numbers<[1], [0], [0], [1], [0, 0, 1, 1], [], []>} : vector<4x8xf32>, vector<8x316xf32>, vector<4x316xf32> -> vector<4x316xf32>
    %75 = arith.addf %70, %74 : vector<4x316xf32>
    %76 = vector.extract_strided_slice %54 {offsets = [0, 21], sizes = [8, 316], strides = [1, 1]} : vector<8x358xf32> to vector<8x316xf32>
    %c1_70 = arith.constant 1 : index
    %c1_71 = arith.constant 1 : index
    %c0_72 = arith.constant 0 : index
    %c0_73 = arith.constant 0 : index
    %77 = vector.load %arg4[%c1_70, %c1_71, %c0_72, %c0_73] : memref<3x3x4x8xf32, #tpu.memory_space<vmem>>, vector<1x1x4x8xf32>
    %78 = vector.shape_cast %77 : vector<1x1x4x8xf32> to vector<4x8xf32>
    %cst_74 = arith.constant dense<0.000000e+00> : vector<4x316xf32>
    %79 = tpu.matmul %78, %76, %cst_74 {dimension_numbers = #tpu.dot_dimension_numbers<[1], [0], [0], [1], [0, 0, 1, 1], [], []>} : vector<4x8xf32>, vector<8x316xf32>, vector<4x316xf32> -> vector<4x316xf32>
    %80 = arith.addf %75, %79 : vector<4x316xf32>
    %81 = vector.extract_strided_slice %54 {offsets = [0, 22], sizes = [8, 316], strides = [1, 1]} : vector<8x358xf32> to vector<8x316xf32>
    %c1_75 = arith.constant 1 : index
    %c2_76 = arith.constant 2 : index
    %c0_77 = arith.constant 0 : index
    %c0_78 = arith.constant 0 : index
    %82 = vector.load %arg4[%c1_75, %c2_76, %c0_77, %c0_78] : memref<3x3x4x8xf32, #tpu.memory_space<vmem>>, vector<1x1x4x8xf32>
    %83 = vector.shape_cast %82 : vector<1x1x4x8xf32> to vector<4x8xf32>
    %cst_79 = arith.constant dense<0.000000e+00> : vector<4x316xf32>
    %84 = tpu.matmul %83, %81, %cst_79 {dimension_numbers = #tpu.dot_dimension_numbers<[1], [0], [0], [1], [0, 0, 1, 1], [], []>} : vector<4x8xf32>, vector<8x316xf32>, vector<4x316xf32> -> vector<4x316xf32>
    %85 = arith.addf %80, %84 : vector<4x316xf32>
    %86 = vector.extract_strided_slice %54 {offsets = [0, 40], sizes = [8, 316], strides = [1, 1]} : vector<8x358xf32> to vector<8x316xf32>
    %c2_80 = arith.constant 2 : index
    %c0_81 = arith.constant 0 : index
    %c0_82 = arith.constant 0 : index
    %c0_83 = arith.constant 0 : index
    %87 = vector.load %arg4[%c2_80, %c0_81, %c0_82, %c0_83] : memref<3x3x4x8xf32, #tpu.memory_space<vmem>>, vector<1x1x4x8xf32>
    %88 = vector.shape_cast %87 : vector<1x1x4x8xf32> to vector<4x8xf32>
    %cst_84 = arith.constant dense<0.000000e+00> : vector<4x316xf32>
    %89 = tpu.matmul %88, %86, %cst_84 {dimension_numbers = #tpu.dot_dimension_numbers<[1], [0], [0], [1], [0, 0, 1, 1], [], []>} : vector<4x8xf32>, vector<8x316xf32>, vector<4x316xf32> -> vector<4x316xf32>
    %90 = arith.addf %85, %89 : vector<4x316xf32>
    %91 = vector.extract_strided_slice %54 {offsets = [0, 41], sizes = [8, 316], strides = [1, 1]} : vector<8x358xf32> to vector<8x316xf32>
    %c2_85 = arith.constant 2 : index
    %c1_86 = arith.constant 1 : index
    %c0_87 = arith.constant 0 : index
    %c0_88 = arith.constant 0 : index
    %92 = vector.load %arg4[%c2_85, %c1_86, %c0_87, %c0_88] : memref<3x3x4x8xf32, #tpu.memory_space<vmem>>, vector<1x1x4x8xf32>
    %93 = vector.shape_cast %92 : vector<1x1x4x8xf32> to vector<4x8xf32>
    %cst_89 = arith.constant dense<0.000000e+00> : vector<4x316xf32>
    %94 = tpu.matmul %93, %91, %cst_89 {dimension_numbers = #tpu.dot_dimension_numbers<[1], [0], [0], [1], [0, 0, 1, 1], [], []>} : vector<4x8xf32>, vector<8x316xf32>, vector<4x316xf32> -> vector<4x316xf32>
    %95 = arith.addf %90, %94 : vector<4x316xf32>
    %96 = vector.extract_strided_slice %54 {offsets = [0, 42], sizes = [8, 316], strides = [1, 1]} : vector<8x358xf32> to vector<8x316xf32>
    %c2_90 = arith.constant 2 : index
    %c2_91 = arith.constant 2 : index
    %c0_92 = arith.constant 0 : index
    %c0_93 = arith.constant 0 : index
    %97 = vector.load %arg4[%c2_90, %c2_91, %c0_92, %c0_93] : memref<3x3x4x8xf32, #tpu.memory_space<vmem>>, vector<1x1x4x8xf32>
    %98 = vector.shape_cast %97 : vector<1x1x4x8xf32> to vector<4x8xf32>
    %cst_94 = arith.constant dense<0.000000e+00> : vector<4x316xf32>
    %99 = tpu.matmul %98, %96, %cst_94 {dimension_numbers = #tpu.dot_dimension_numbers<[1], [0], [0], [1], [0, 0, 1, 1], [], []>} : vector<4x8xf32>, vector<8x316xf32>, vector<4x316xf32> -> vector<4x316xf32>
    %100 = arith.addf %95, %99 : vector<4x316xf32>
    %101 = vector.extract_strided_slice %1 {offsets = [0, 42], sizes = [4, 316], strides = [1, 1]} : vector<4x400xf32> to vector<4x316xf32>
    %c0_95 = arith.constant 0 : index
    %c0_96 = arith.constant 0 : index
    %102 = vector.load %arg5[%c0_95, %c0_96] : memref<4x1xf32, #tpu.memory_space<vmem>>, vector<4x1xf32>
    %103 = vector.broadcast %102 : vector<4x1xf32> to vector<4x316xf32>
    %104 = arith.addf %100, %103 : vector<4x316xf32>
    %105 = arith.addf %104, %101 : vector<4x316xf32>
    %106 = math.tanh %105 : vector<4x316xf32>
    %c0_97 = arith.constant 0 : index
    %c0_98 = arith.constant 0 : index
    %c0_99 = arith.constant 0 : index
    %107 = vector.load %arg7[%c0_97, %c0_98, %c0_99] : memref<1x4x316xf32, #tpu.memory_space<vmem>>, vector<1x4x316xf32>
    %108 = vector.shape_cast %107 : vector<1x4x316xf32> to vector<4x316xf32>
    %109 = vector.shape_cast %106 : vector<4x316xf32> to vector<1x4x316xf32>
    tpu.vector_store %arg7[%c0_97, %c0_98, %c0_99], %109 {strides = array<i32>} : memref<1x4x316xf32, #tpu.memory_space<vmem>>, vector<1x4x316xf32>,
    return
  }
  func.func @transform_0(%arg0: i32) -> (i32, i32, i32) {
    %c0_i32 = arith.constant 0 : i32
    %c0_i32_0 = arith.constant 0 : i32
    %c0_i32_1 = arith.constant 0 : i32
    return %arg0, %c0_i32, %c0_i32_0 : i32, i32, i32
  }
  func.func @transform_1(%arg0: i32) -> (i32, i32, i32, i32) {
    %c0_i32 = arith.constant 0 : i32
    %c0_i32_0 = arith.constant 0 : i32
    %c0_i32_1 = arith.constant 0 : i32
    %c0_i32_2 = arith.constant 0 : i32
    %c0_i32_3 = arith.constant 0 : i32
    return %c0_i32, %c0_i32_0, %c0_i32_1, %c0_i32_2 : i32, i32, i32, i32
  }
  func.func @transform_2(%arg0: i32) -> (i32, i32) {
    %c0_i32 = arith.constant 0 : i32
    %c0_i32_0 = arith.constant 0 : i32
    %c0_i32_1 = arith.constant 0 : i32
    return %c0_i32, %c0_i32_0 : i32, i32
  }
  func.func @transform_3(%arg0: i32) -> (i32, i32, i32, i32) {
    %c0_i32 = arith.constant 0 : i32
    %c0_i32_0 = arith.constant 0 : i32
    %c0_i32_1 = arith.constant 0 : i32
    %c0_i32_2 = arith.constant 0 : i32
    %c0_i32_3 = arith.constant 0 : i32
    return %c0_i32, %c0_i32_0, %c0_i32_1, %c0_i32_2 : i32, i32, i32, i32
  }
  func.func @transform_4(%arg0: i32) -> (i32, i32) {
    %c0_i32 = arith.constant 0 : i32
    %c0_i32_0 = arith.constant 0 : i32
    %c0_i32_1 = arith.constant 0 : i32
    return %c0_i32, %c0_i32_0 : i32, i32
  }
  func.func @transform_5(%arg0: i32) -> (i32, i32) {
    %c0_i32 = arith.constant 0 : i32
    %c0_i32_0 = arith.constant 0 : i32
    %c0_i32_1 = arith.constant 0 : i32
    return %c0_i32, %c0_i32_0 : i32, i32
  }
  func.func @transform_6(%arg0: i32) -> (i32, i32, i32) {
    %c0_i32 = arith.constant 0 : i32
    %c0_i32_0 = arith.constant 0 : i32
    %c0_i32_1 = arith.constant 0 : i32
    return %arg0, %c0_i32, %c0_i32_0 : i32, i32, i32
  }
}

</mosaic_0001>

<bundles_post_ra>
// kernel: tpu_custom_call.1
= control target key start
LH: loop header
LB: loop body
LE: loop exit
PB: predicated region body
PF: predicated region fallthrough
CT: control target
= control target key end

     0   :  { %11 = vsyncpa [#allocation3], 0  ;;  %s4133_s0 = inlined_call_operand.vmem [shape: f32[2,4,400], index: 0, kind: input, shape index: {}]   ;;  %s4134_s1 = inlined_call_operand.vmem [shape: f32[3,3,8,4], index: 1, kind: input, shape index: {}]   ;;  %s4135_s2 = inlined_call_operand.vmem [shape: f32[8,1], index: 2, kind: input, shape index: {}]   ;;  %s4136_s3 = inlined_call_operand.vmem [shape: f32[3,3,4,8], index: 3, kind: input, shape index: {}]   ;;  %s4137_s4 = inlined_call_operand.vmem [shape: f32[4,1], index: 4, kind: input, shape index: {}]   ;;  %s4138_s5 = inlined_call_operand.vmem [shape: f32[1,358], index: 5, kind: input, shape index: {}]   ;;  %s4139_s6 = inlined_call_operand.hbm [shape: f32[2,4,316], index: 6, kind: output, shape index: {}]  }
   0x1   :  { %13 = vsyncpa [#allocation3 + $0x1], 0  ;;  %s3710_s21 = smov 0   ;;  %s3712_s22 = smov 0  }
   0x2   :  { %s3714_s23 = smov 0   ;;  %s3716_s24 = smov 0  }
   0x3 LB: > { %s3731_s25 = sadd.s32 4294967295, %s3661_s24   ;;  %s3284_s26 = sadd.s32 4294967294, %s3661_s24   ;;  %s3661_s24 = sphi %s3716_s24, %s4145_s24   ;;  %s3657_s23 = sphi %s3714_s23, %s4144_s23   ;;  %s3653_s22 = sphi %s3712_s22, %s4143_s22   ;;  %s3649_s21 = sphi %s3710_s21, %s4142_s21  }
   0x4   : > { %s3735_s27 = sadd.s32 1, %s3661_s24   ;;  %s157_s28 = sadd.s32 1, %s3657_s23 }
   0x5   : > { %s154_s29 = ssub.s32 %s3661_s24, %s3735_s27  ;;  %p167_p0 = scmp.ne.s32.totalorder %s3657_s23, %s3653_s22 }
   0x6   : > { %p155_p1 = scmp.eq.s32.totalorder %s154_s29, 0  ;;  %p168_p2 = scmp.eq.s32.totalorder %s3731_s25, 1 }
   0x7   : > { %p173_p3 = scmp.ne.s32.totalorder %s3653_s22, %s3649_s21  ;;  %p174_p4 = scmp.eq.s32.totalorder %s3284_s26, 1 }
   0x8   : > { %s3746_s30 = scalar_select %p155_p1, %s3657_s23, %s157_s28  }
   0x9   : > { %p3748_p5 = por %p168_p2, %p167_p0  ;;  %p3752_p6 = por %p174_p4, %p173_p3 }
   0xa   : > { %p3287_p7 = scmp.ge.s32.totalorder %s3661_s24, 1  ;;  %p215_p8 = scmp.lt.s32.totalorder %s3661_s24, 3 }
   0xc   : > { %p216_p9 = pnand %p3287_p7, %p215_p8 }
   0xd   : > { %p245_p10 = scmp.lt.s32.totalorder (!%p216_p9), %s3731_s25, 1  ;;  %v3663_v0 = vmov (!%p216_p9), 0.0   ;;  %vm3664_vm0 = vmmov (!%p216_p9), 0   ;;  %s3665_s14 = smov (!%p216_p9), 127   ;;  %v1727_v5 = vld [vmem:[%s4135_s2] sm:$0xff] (!%p216_p9)  ;;  %v3673_v6 = vmov (!%p216_p9), 0  }
   0xe   : > { %219 = sbr.rel (%p216_p9) target bundleno = 871 (0x367), region = 44  ;;  %3409 = vmatprep.subr.mxu1 (!%p216_p9), %v3663_v0  ;;  %342 = vmatprep.mubr.f32.mxu0 (!%p216_p9), %v3663_v0  ;;  %s3666_s15 = smov (!%p216_p9), 126   ;;  %vm271_vm1 = vcmask (!%p216_p9), 1043456   ;;  %vm264_vm2 = vcmask (!%p216_p9), 1039360   ;;  %v3290_v12 = vld [vmem:[%s4134_s1 + $0x8] sm:$0xff] (!%p216_p9)  ;;  %vm267_vm3 = vcmask (!%p216_p9), 31744  }
   0xf   : > { %3411 = vmatprep.mubr.msk.f32.mxu1 (!%p216_p9), %vm3664_vm0, %v3663_v0  ;;  %s3667_s16 = smov (!%p216_p9), 108   ;;  %s3668_s17 = smov (!%p216_p9), 107   ;;  %3583 = vset.pattern.permute.xlu1 (!%p216_p9), %v3673_v6  ;;  %vm577_vm4 = vcmask (!%p216_p9), 1031168   ;;  %v252_v18 = vld [vmem:[%s4134_s1] sm:$0xff] (!%p216_p9)  ;;  %vm741_vm5 = vcmask (!%p216_p9), 883712   ;;  %v3301_v23 = vld [vmem:[%s4134_s1 + $0x10] sm:$0xff] (!%p216_p9) }
  0x10   : > { %s3669_s18 = smov (!%p216_p9), 106   ;;  %s3670_s19 = smov (!%p216_p9), 88   ;;  %3584 = vset.pattern.permute.xlu0 (!%p216_p9), %v3673_v6  ;;  %v3307_v25 = vld [vmem:[%s4134_s1 + $0x18] sm:$0xff] (!%p216_p9)  ;;  %vm905_vm6 = vcmask (!%p216_p9), 875520   ;;  %v3313_v28 = vld [vmem:[%s4134_s1 + $0x20] sm:$0xff] (!%p216_p9)  ;;  %v3319_v33 = vld [vmem:[%s4134_s1 + $0x28] sm:$0xff] (!%p216_p9) }
  0x11   : > { %s3671_s20 = smov (!%p216_p9), 87   ;;  %s3672_s26 = smov (!%p216_p9), 86   ;;  %vm1069_vm7 = vcmask (!%p216_p9), 867328   ;;  %vm1236_vm8 = vcmask (!%p216_p9), 719872   ;;  %v3325_v42 = vld [vmem:[%s4134_s1 + $0x30] sm:$0xff] (!%p216_p9)  ;;  %vm1403_vm9 = vcmask (!%p216_p9), 711680  }
  0x12   : > { %v3331_v50 = vld [vmem:[%s4134_s1 + $0x38] sm:$0xff] (!%p216_p9)  ;;  %vm1570_vm10 = vcmask (!%p216_p9), 703488   ;;  %v3337_v56 = vld [vmem:[%s4134_s1 + $0x40] sm:$0xff] (!%p216_p9)  ;;  %vm1776_vm11 = vcmask (!%p216_p9), 64512   ;;  %vm3208_vm12 = vcmask (!%p216_p9), 486400   ;;  %s3532_s29 = smul.u32 (!%p216_p9), 192, %s3731_s25 }
  0x14   : > { %s4091_s12 = scalar_lea.hbm (!%p216_p9), %s4139_s6, %s3532_s29 }
  0x15   : > { %s246_s9 = scalar_select %p245_p10, %s3731_s25, 1 }
  0x16   : > { %s3674_s25 = smov [#allocation2]  }
  0x17   : > { %s3372_s10 = sshll.u32 %s246_s9, 4 }
  0x18   : > { %s249_s13 = scalar_lea.vmem %s4133_s0, %s3372_s10 }
  0x19   : > { %v3767_v1 = vld [vmem:[%s249_s13] sm:$0xff]  ;;  %v3774_v3 = vld [vmem:[%s249_s13 + $0x8] sm:$0xff] }
  0x1a   : > { %258 = vrot.lane.b32.xlu1 %v3767_v1, %s3665_s14  ;;  %v257_v2 = vcombine.high %v3767_v1, %v3767_v1  ;;  %v1227_v4 = vcombine.high %v3774_v3, %v3774_v3 }
  0x1c   : > { %260 = vrot.lane.b32.xlu0 %v257_v2, %s3665_s14 }
  0x1e   : > { %573 = vrot.lane.b32.xlu1 %v257_v2, %s3666_s15 }
  0x20   : > { %262 = vrot.lane.b32.xlu0 %v3774_v3, %s3665_s14 }
  0x22   : > { %571 = vrot.lane.b32.xlu1 %v3767_v1, %s3666_s15 }
  0x24   : > { %575 = vrot.lane.b32.xlu0 %v3774_v3, %s3666_s15 }
  0x26   : > { %739 = vrot.lane.b32.xlu1 %v3774_v3, %s3667_s16 }
  0x28   : > { %737 = vrot.lane.b32.xlu0 %v257_v2, %s3667_s16 }
  0x2a   : > { %901 = vrot.lane.b32.xlu1 %v257_v2, %s3668_s17 }
  0x2c   : > { %735 = vrot.lane.b32.xlu0 %v3767_v1, %s3667_s16 }
  0x2e   : > { %899 = vrot.lane.b32.xlu1 %v3767_v1, %s3668_s17 }
  0x30   : > { %903 = vrot.lane.b32.xlu0 %v3774_v3, %s3668_s17 }
  0x32   : > { %1067 = vrot.lane.b32.xlu1 %v3774_v3, %s3669_s18 }
  0x34   : > { %1065 = vrot.lane.b32.xlu0 %v257_v2, %s3669_s18 }
  0x36   : > { %1230 = vrot.lane.b32.xlu1 %v257_v2, %s3670_s19 }
  0x38   : > { %1063 = vrot.lane.b32.xlu0 %v3767_v1, %s3669_s18 }
  0x3a   : > { %1228 = vrot.lane.b32.xlu1 %v3767_v1, %s3670_s19 }
  0x3c   : > { %1232 = vrot.lane.b32.xlu0 %v3774_v3, %s3670_s19 }
  0x3e   : > { %1397 = vrot.lane.b32.xlu1 %v257_v2, %s3671_s20 }
  0x40   : > { %1234 = vrot.lane.b32.xlu0 %v1227_v4, %s3670_s19 }
  0x42   : > { %1395 = vrot.lane.b32.xlu1 %v3767_v1, %s3671_s20 }
  0x44   : > { %1399 = vrot.lane.b32.xlu0 %v3774_v3, %s3671_s20 }
  0x46   : > { %1564 = vrot.lane.b32.xlu1 %v257_v2, %s3672_s26 }
  0x48   : > { %1401 = vrot.lane.b32.xlu0 %v1227_v4, %s3671_s20 }
  0x4a   : > { %1568 = vrot.lane.b32.xlu1 %v1227_v4, %s3672_s26 }
  0x4c   : > { %1566 = vrot.lane.b32.xlu0 %v3774_v3, %s3672_s26 }
  0x4e   : > { %1730 = vperm.xlu1 %3583, %v1727_v5  }
  0x50   : > { %1562 = vrot.lane.b32.xlu0 %v3767_v1, %s3672_s26 }
  0x8c   : > { %v259_v7 = vpop.permute.xlu1 %258 }
  0x8e   : > { %v261_v8 = vpop.permute.xlu0 %260 }
  0x8f   : > { %v265_v13 = vsel %vm264_vm2, %v259_v7, %v261_v8 }
  0x90   : > { %v574_v9 = vpop.permute.xlu1 %573 }
  0x92   : > { %v263_v10 = vpop.permute.xlu0 %262 }
  0x93   : > { %3410 = vmatpush3.msk.msra.mxu1 %vm271_vm1, %v263_v10  ;;  %v266_v11 = vsel %vm264_vm2, %v261_v8, %v263_v10 }
  0x94   : > { %3291 = vmatprep.subr.msk.mxu0 %vm271_vm1, %v266_v11  ;;  %v572_v14 = vpop.permute.xlu1 %571  ;;  %3412 = vmatmul.mubr.msk.f32.vlgmr.msra.gmra.mrb[0].mxu1 %vm267_vm3, %v3290_v12 }
  0x95   : > { %3292 = vmatpush1.msk.msra.mxu0 %vm271_vm1, %v265_v13  ;;  %3414 = vmatprep.subr.mxu1 %v3663_v0  ;;  %v578_v20 = vsel %vm577_vm4, %v572_v14, %v574_v9 }
  0x96   : > { %3293 = vmatmul.mubr.msk.f32.vlgmr.msra.gmra.mrb[0].mxu0 %vm267_vm3, %v3290_v12  ;;  %v576_v15 = vpop.permute.xlu0 %575  ;;  %3296 = vmatprep.subr.msk.mxu0 %vm271_vm1, %v257_v2 }
  0x97   : > { %v579_v16 = vsel %vm577_vm4, %v574_v9, %v576_v15  ;;  %3297 = vmatpush1.msk.msra.mxu0 %vm271_vm1, %v3767_v1  ;;  %492 = vmatprep.mubr.f32.mxu0 %v3663_v0 }
  0x98   : > { %v740_v17 = vpop.permute.xlu1 %739  ;;  %3415 = vmatpush3.msk.msra.mxu1 %vm271_vm1, %v3774_v3  ;;  %3302 = vmatprep.subr.msk.mxu0 %vm271_vm1, %v579_v16 }
  0x99   : > { %3416 = vmatprep.mubr.msk.f32.mxu1 %vm3664_vm0, %v3663_v0  ;;  %3419 = vmatprep.subr.mxu1 %v3663_v0 }
  0x9a   : > { %v738_v19 = vpop.permute.xlu0 %737  ;;  %3417 = vmatmul.mubr.msk.f32.vlgmr.msra.gmra.mrb[2].mxu1 %vm267_vm3, %v252_v18 }
  0x9b   : > { %3420 = vmatpush3.msk.msra.mxu1 %vm271_vm1, %v576_v15  ;;  %3421 = vmatprep.mubr.msk.f32.mxu1 %vm3664_vm0, %v3663_v0  ;;  %v743_v22 = vsel %vm741_vm5, %v738_v19, %v740_v17 }
  0x9c   : > { %v902_v21 = vpop.permute.xlu1 %901  ;;  %3424 = vmatprep.subr.mxu1 %v3663_v0 }
  0x9e   : > { %3298 = vmatmul.mubr.msk.f32.vlgmr.msra.gmra.mrb[0].mxu0 %vm267_vm3, %v252_v18  ;;  %v736_v24 = vpop.permute.xlu0 %735  ;;  %3422 = vmatmul.mubr.msk.f32.vlgmr.msra.gmra.mrb[4].mxu1 %vm267_vm3, %v3301_v23 }
  0x9f   : > { %3303 = vmatpush1.msk.msra.mxu0 %vm271_vm1, %v578_v20  ;;  %653 = vmatprep.mubr.f32.mxu0 %v3663_v0  ;;  %v742_v29 = vsel %vm741_vm5, %v736_v24, %v738_v19 }
  0xa0   : > { %v900_v26 = vpop.permute.xlu1 %899  ;;  %3308 = vmatprep.subr.msk.mxu0 %vm271_vm1, %v743_v22  ;;  %3425 = vmatpush3.msk.msra.mxu1 %vm271_vm1, %v740_v17 }
  0xa1   : > { %3426 = vmatprep.mubr.msk.f32.mxu1 %vm3664_vm0, %v3663_v0  ;;  %3429 = vmatprep.subr.mxu1 %v3663_v0  ;;  %v906_v36 = vsel %vm905_vm6, %v900_v26, %v902_v21 }
  0xa2   : > { %v904_v27 = vpop.permute.xlu0 %903  ;;  %3427 = vmatmul.mubr.msk.f32.vlgmr.msra.gmra.mrb[6].mxu1 %vm267_vm3, %v3307_v25 }
  0xa3   : > { %3430 = vmatpush3.msk.msra.mxu1 %vm271_vm1, %v904_v27  ;;  %3431 = vmatprep.mubr.msk.f32.mxu1 %vm3664_vm0, %v3663_v0  ;;  %v907_v31 = vsel %vm905_vm6, %v902_v21, %v904_v27 }
  0xa4   : > { %v1068_v30 = vpop.permute.xlu1 %1067  ;;  %3434 = vmatprep.subr.mxu1 %v3663_v0 }
  0xa6   : > { %3304 = vmatmul.mubr.msk.f32.vlgmr.msra.gmra.mrb[0].mxu0 %vm267_vm3, %v3301_v23  ;;  %v1066_v32 = vpop.permute.xlu0 %1065  ;;  %3432 = vmatmul.mubr.msk.f32.vlgmr.msra.gmra.mrb[8].mxu1 %vm267_vm3, %v3313_v28  ;;  %v1741_v23 = vlaneseq }
  0xa7   : > { %3309 = vmatpush1.msk.msra.mxu0 %vm271_vm1, %v742_v29  ;;  %817 = vmatprep.mubr.f32.mxu0 %v3663_v0  ;;  %v1071_v38 = vsel %vm1069_vm7, %v1066_v32, %v1068_v30 }
  0xa8   : > { %v1231_v34 = vpop.permute.xlu1 %1230  ;;  %3314 = vmatprep.subr.msk.mxu0 %vm271_vm1, %v907_v31  ;;  %3435 = vmatpush3.msk.msra.mxu1 %vm271_vm1, %v1068_v30  ;;  %v1739_v30 = vld [vmem:[%s4138_s5] sm:$0x7] }
  0xa9   : > { %3436 = vmatprep.mubr.msk.f32.mxu1 %vm3664_vm0, %v3663_v0  ;;  %3439 = vmatprep.subr.mxu1 %v3663_v0 }
  0xaa   : > { %v1064_v35 = vpop.permute.xlu0 %1063  ;;  %3437 = vmatmul.mubr.msk.f32.vlgmr.msra.gmra.mrb[10].mxu1 %vm267_vm3, %v3319_v33 }
  0xab   : > { %3441 = vmatprep.mubr.msk.f32.mxu1 %vm3664_vm0, %v3663_v0  ;;  %v1070_v44 = vsel %vm1069_vm7, %v1064_v35, %v1066_v32 }
  0xac   : > { %v1229_v37 = vpop.permute.xlu1 %1228 }
  0xad   : > { %v1237_v52 = vsel %vm1236_vm8, %v1229_v37, %v1231_v34 }
  0xae   : > { %3310 = vmatmul.mubr.msk.f32.vlgmr.msra.gmra.mrb[0].mxu0 %vm267_vm3, %v3307_v25  ;;  %v1233_v39 = vpop.permute.xlu0 %1232 }
  0xaf   : > { %3315 = vmatpush1.msk.msra.mxu0 %vm271_vm1, %v906_v36  ;;  %981 = vmatprep.mubr.f32.mxu0 %v3663_v0  ;;  %v1238_v46 = vsel %vm1236_vm8, %v1231_v34, %v1233_v39 }
  0xb0   : > { %v1398_v40 = vpop.permute.xlu1 %1397  ;;  %3320 = vmatprep.subr.msk.mxu0 %vm271_vm1, %v1071_v38 }
  0xb2   : > { %v1235_v41 = vpop.permute.xlu0 %1234 }
  0xb3   : > { %v1239_v43 = vsel %vm1236_vm8, %v1233_v39, %v1235_v41 }
  0xb4   : > { %v1396_v45 = vpop.permute.xlu1 %1395  ;;  %3440 = vmatpush3.msk.msra.mxu1 %vm271_vm1, %v1239_v43 }
  0xb5   : > { %3442 = vmatmul.mubr.msk.f32.vlgmr.msra.gmra.mrb[12].mxu1 %vm267_vm3, %v3325_v42  ;;  %3444 = vmatprep.subr.mxu1 %v3663_v0  ;;  %v1404_v58 = vsel %vm1403_vm9, %v1396_v45, %v1398_v40 }
  0xb6   : > { %3316 = vmatmul.mubr.msk.f32.vlgmr.msra.gmra.mrb[0].mxu0 %vm267_vm3, %v3313_v28  ;;  %v1400_v47 = vpop.permute.xlu0 %1399  ;;  %3446 = vmatprep.mubr.msk.f32.mxu1 %vm3664_vm0, %v3663_v0  ;;  %v1742_v28 = vshrl.u32 %v1741_v23, 7 }
  0xb7   : > { %3321 = vmatpush1.msk.msra.mxu0 %vm271_vm1, %v1070_v44  ;;  %1145 = vmatprep.mubr.f32.mxu0 %v3663_v0  ;;  %v1405_v54 = vsel %vm1403_vm9, %v1398_v40, %v1400_v47 }
  0xb8   : > { %v1565_v48 = vpop.permute.xlu1 %1564  ;;  %3326 = vmatprep.subr.msk.mxu0 %vm271_vm1, %v1238_v46  ;;  %v1751_v29 = vsub.s32 2, %v1742_v28  ;;  %v1747_v38 = vsub.s32 1, %v1742_v28  ;;  %v1743_v39 = vsub.s32 0, %v1742_v28  ;;  %v3185_v46 = vld [vmem:[%s4137_s4] sm:$0xf] }
  0xba   : > { %v1402_v49 = vpop.permute.xlu0 %1401  ;;  %v1752_v31 = vrot.slane %v1739_v30, %v1751_v29  ;;  %v1748_v40 = vrot.slane %v1739_v30, %v1747_v38 }
  0xbb   : > { %v1406_v51 = vsel %vm1403_vm9, %v1400_v47, %v1402_v49  ;;  %v3343_v47 = vld [vmem:[%s4136_s3 + $0x4] sm:$0xf]  ;;  %v1759_v49 = vld [vmem:[%s4136_s3] sm:$0xf] }
  0xbc   : > { %3445 = vmatpush3.msk.msra.mxu1 %vm271_vm1, %v1406_v51  ;;  %v1569_v53 = vpop.permute.xlu1 %1568 }
  0xbd   : > { %3447 = vmatmul.mubr.msk.f32.vlgmr.msra.gmra.mrb[14].mxu1 %vm267_vm3, %v3331_v50  ;;  %3449 = vmatprep.subr.mxu1 %v3663_v0 }
  0xbe   : > { %3322 = vmatmul.mubr.msk.f32.vlgmr.msra.gmra.mrb[0].mxu0 %vm267_vm3, %v3319_v33  ;;  %v3924_v55 = vpop.permute.xlu0 %1566  ;;  %3451 = vmatprep.mubr.msk.f32.mxu1 %vm3664_vm0, %v3663_v0 }
  0xbf   : > { %3327 = vmatpush1.msk.msra.mxu0 %vm271_vm1, %v1237_v52  ;;  %v1573_v57 = vsel %vm1570_vm10, %v3924_v55, %v1569_v53  ;;  %1313 = vmatprep.mubr.f32.mxu0 %v3663_v0  ;;  %v3944_v59 = vsel %vm1570_vm10, %v1565_v48, %v3924_v55 }
  0xc0   : > { %3450 = vmatpush3.msk.msra.mxu1 %vm271_vm1, %v1573_v57  ;;  %3332 = vmatprep.subr.msk.mxu0 %vm271_vm1, %v1405_v54 }
  0xc1   : > { %3452 = vmatmul.mubr.msk.f32.vlgmr.msra.gmra.mrb[16].mxu1 %vm267_vm3, %v3337_v56  ;;  %3454 = vmatprep.subr.mxu1 %v3663_v0 }
  0xc2   : > { %3456 = vmatprep.mubr.msk.f32.mxu1 %vm3664_vm0, %v3663_v0  ;;  %v1563_v60 = vpop.permute.xlu0 %1562 }
  0xc3   : > { %v3952_v61 = vsel %vm1570_vm10, %v1563_v60, %v1565_v48  ;;  %v3348_v60 = vld [vmem:[%s4136_s3 + $0x8] sm:$0xf] }
  0xc6   : > { %3328 = vmatmul.mubr.msk.f32.vlgmr.msra.gmra.mrb[0].mxu0 %vm267_vm3, %v3325_v42  ;;  %v1744_v42 = vrot.slane %v1739_v30, %v1743_v39 }
  0xc7   : > { %3333 = vmatpush1.msk.msra.mxu0 %vm271_vm1, %v1404_v58  ;;  %1480 = vmatprep.mubr.f32.mxu0 %v3663_v0 }
  0xc8   : > { %3338 = vmatprep.subr.msk.mxu0 %vm271_vm1, %v3944_v59 }
  0xcd   : > { %v1731_v24 = vpop.permute.xlu1 %1730 }
  0xce   : > { %3334 = vmatmul.mubr.msk.f32.vlgmr.msra.gmra.mrb[0].mxu0 %vm267_vm3, %v3331_v50 }
  0xcf   : > { %3339 = vmatpush1.msk.msra.mxu0 %vm271_vm1, %v3952_v61  ;;  %1647 = vmatprep.mubr.f32.mxu0 %v3663_v0 }
  0xd6   : > { %3340 = vmatmul.mubr.msk.f32.vlgmr.msra.gmra.mrb[0].mxu0 %vm267_vm3, %v3337_v56 }
  0xd7   : > { %1844 = vmatprep.mubr.f32.mxu0 %v3663_v0 }
 0x167   : > { %v415_v62 = vpop.f32.mrb[0].mxu1 }
 0x168   : > { %v3413_v63 = vpop.f32.mrb[1].mxu1 }
 0x16d   : > { %v565_v1 = vpop.f32.mrb[2].mxu1 }
 0x16e   : > { %v566_v2 = vadd.f32 %v565_v1, %v415_v62  ;;  %v3418_v3 = vpop.f32.mrb[3].mxu1 }
 0x171   : > { %v726_v4 = vpop.f32.mrb[4].mxu1 }
 0x172   : > { %v732_v5 = vadd.f32 %v726_v4, %v566_v2  ;;  %v3423_v6 = vpop.f32.mrb[5].mxu1  ;;  %v3351_v2 = vld [vmem:[%s4136_s3 + $0xc] sm:$0xf] }
 0x175   : > { %v890_v7 = vpop.f32.mrb[6].mxu1 }
 0x176   : > { %v896_v8 = vadd.f32 %v890_v7, %v732_v5  ;;  %v3428_v9 = vpop.f32.mrb[7].mxu1  ;;  %v3354_v7 = vld [vmem:[%s4136_s3 + $0x10] sm:$0xf] }
 0x179   : > { %v1054_v10 = vpop.f32.mrb[8].mxu1 }
 0x17a   : > { %v1060_v11 = vadd.f32 %v1054_v10, %v896_v8  ;;  %v3433_v12 = vpop.f32.mrb[9].mxu1 }
 0x17d   : > { %v1218_v13 = vpop.f32.mrb[10].mxu1 }
 0x17e   : > { %v1224_v14 = vadd.f32 %v1218_v13, %v1060_v11  ;;  %v3438_v15 = vpop.f32.mrb[11].mxu1  ;;  %v3357_v11 = vld [vmem:[%s4136_s3 + $0x14] sm:$0xf] }
 0x188   : > { %v1386_v16 = vpop.f32.mrb[12].mxu1 }
 0x189   : > { %v1392_v17 = vadd.f32 %v1386_v16, %v1224_v14  ;;  %v3443_v18 = vpop.f32.mrb[13].mxu1 }
 0x18a   : > { %v3360_v18 = vld [vmem:[%s4136_s3 + $0x18] sm:$0xf] }
 0x190   : > { %v1553_v19 = vpop.f32.mrb[14].mxu1 }
 0x191   : > { %v1559_v20 = vadd.f32 %v1553_v19, %v1392_v17  ;;  %v3448_v21 = vpop.f32.mrb[15].mxu1 }
 0x194   : > { %v1720_v22 = vpop.f32.mrb[16].mxu1 }
 0x195   : > { %v1726_v25 = vadd.f32 %v1720_v22, %v1559_v20  ;;  %v3453_v26 = vpop.f32.mrb[17].mxu1  ;;  %v3363_v22 = vld [vmem:[%s4136_s3 + $0x1c] sm:$0xf] }
 0x197   : > { %v1735_v27 = vadd.f32 %v1731_v24, %v1726_v25 }
 0x199   : > { %3587 = vtanh.f32 %v1735_v27  ;;  %v3366_v27 = vld [vmem:[%s4136_s3 + $0x20] sm:$0xf] }
 0x1a3   : > { %v3588_v32 = vpop.eup %3587 }
 0x1a4   : > { %v1758_v33 = vmul.f32 %v3588_v32, %v1752_v31 }
 0x1a6   : > { %1769 = vrot.lane.b32.xlu1 %v1758_v33, %s3665_s14 }
 0x1a9   : > { %v1649_v34 = vpop.f32.mrb[0].mxu0 }
 0x1aa   : > { %v1651_v35 = vpop.f32.mrb[1].mxu0  ;;  %v1733_v36 = vadd.f32 %v1731_v24, %v1649_v34 }
 0x1ab   : > { %v1734_v37 = vadd.f32 %v1731_v24, %v1651_v35 }
 0x1ad   : > { %3589 = vtanh.f32 %v1734_v37 }
 0x1ae   : > { %3591 = vtanh.f32 %v1733_v36 }
 0x1b7   : > { %v3590_v41 = vpop.eup %3589 }
 0x1b8   : > { %v1757_v43 = vmul.f32 %v3590_v41, %v1748_v40  ;;  %v3592_v44 = vpop.eup %3591 }
 0x1b9   : > { %v1756_v45 = vmul.f32 %v3592_v44, %v1744_v42 }
 0x1ba   : > { %2069 = vrot.lane.b32.xlu1 %v1757_v43, %s3666_s15  ;;  %1767 = vrot.lane.b32.xlu0 %v1757_v43, %s3665_s14 }
 0x1be   : > { %2067 = vrot.lane.b32.xlu1 %v1756_v45, %s3666_s15  ;;  %1765 = vrot.lane.b32.xlu0 %v1756_v45, %s3665_s14  ;;  %s3603_s14 = sshll.u32 %s3674_s25, 4  ;;  %s3604_s14 = int_to_ptr.vmem [resolvable:$false] %s3603_s14 }
 0x1c2   : > { %2231 = vrot.lane.b32.xlu1 %v1758_v33, %s3667_s16  ;;  %2071 = vrot.lane.b32.xlu0 %v1758_v33, %s3666_s15  ;;  %s3605_s15 = scalar_lea.vmem %s3604_s14, 384 }
 0x1c6   : > { %2389 = vrot.lane.b32.xlu1 %v1757_v43, %s3668_s17  ;;  %2229 = vrot.lane.b32.xlu0 %v1757_v43, %s3667_s16 }
 0x1ca   : > { %2387 = vrot.lane.b32.xlu1 %v1756_v45, %s3668_s17  ;;  %2227 = vrot.lane.b32.xlu0 %v1756_v45, %s3667_s16 }
 0x1ce   : > { %2551 = vrot.lane.b32.xlu1 %v1758_v33, %s3669_s18  ;;  %2391 = vrot.lane.b32.xlu0 %v1758_v33, %s3668_s17 }
 0x1d2   : > { %2709 = vrot.lane.b32.xlu1 %v1757_v43, %s3670_s19  ;;  %2549 = vrot.lane.b32.xlu0 %v1757_v43, %s3669_s18 }
 0x1d6   : > { %2707 = vrot.lane.b32.xlu1 %v1756_v45, %s3670_s19  ;;  %2547 = vrot.lane.b32.xlu0 %v1756_v45, %s3669_s18 }
 0x1da   : > { %2871 = vrot.lane.b32.xlu1 %v1758_v33, %s3671_s20  ;;  %2711 = vrot.lane.b32.xlu0 %v1758_v33, %s3670_s19  ;;  %s242_s19 = sand.u32 1, %s3653_s22  }
 0x1db   : > { %s3211_s13 = scalar_lea.sflag [#allocation3], %s242_s19 }
 0x1de   : > { %3029 = vrot.lane.b32.xlu1 %v1757_v43, %s3672_s26  ;;  %2869 = vrot.lane.b32.xlu0 %v1757_v43, %s3671_s20 }
 0x1e2   : > { %3027 = vrot.lane.b32.xlu1 %v1756_v45, %s3672_s26  ;;  %2867 = vrot.lane.b32.xlu0 %v1756_v45, %s3671_s20  ;;  %s3531_s20 = smul.u32 12, %s242_s19 }
 0x1e6   : > { %3031 = vrot.lane.b32.xlu0 %v1758_v33, %s3672_s26  ;;  %s244_s26 = scalar_lea.vmem [#allocation2], %s3531_s20 }
 0x1e7   : > { %s3225_s9 = sshll.u32 %s244_s26, 4  ;;  %s4093_s9 = int_to_ptr.vmem [resolvable:$true] %s3225_s9 }
 0x1e8   : > { %s3599_s28 = scalar_lea.vmem %s4093_s9, 192  ;;  %p3606_p0 = scmp.lt.s32.totalorder %s4093_s9, %s3604_s14 }
 0x1e9   : > { %p3600_p11 = scmp.ne.s32.totalorder %s4093_s9, %s3599_s28  ;;  %p3607_p1 = scmp.lt.s32.totalorder %s3605_s15, %s3599_s28 }
 0x1ea   : > { %3188 = vperm.xlu0 %3584, %v3185_v46  }
 0x1eb   : > { %p3601_p12 = pnand %p3600_p11, %p3748_p5  ;;  %p3608_p2 = por %p3607_p1, %p3606_p0 }
 0x1ed   : > { %p3602_p13 = pneg %p3601_p12 }
 0x1ef   : > { %p3609_p3 = pnand %p3608_p2, %p3602_p13 }
 0x218   : > { %v1770_v48 = vpop.permute.xlu1 %1769 }
 0x219   : > { %3455 = vmatpush3.msra.mxu1 %v1770_v48 }
 0x21a   : > { %3459 = vmatprep.subr.mxu1 %v3663_v0  ;;  %3457 = vmatmul.mubr.msk.f32.vlgmr.msra.gmra.mrb[18].mxu1 %vm1776_vm11, %v3343_v47 }
 0x21b   : > { %3460 = vmatpush3.msra.mxu1 %v1758_v33  ;;  %3461 = vmatprep.mubr.msk.f32.mxu1 %vm3664_vm0, %v3663_v0 }
 0x21c   : > { %3464 = vmatprep.subr.mxu1 %v3663_v0 }
 0x21e   : > { %3462 = vmatmul.mubr.msk.f32.vlgmr.msra.gmra.mrb[20].mxu1 %vm1776_vm11, %v1759_v49 }
 0x21f   : > { %3466 = vmatprep.mubr.msk.f32.mxu1 %vm3664_vm0, %v3663_v0 }
 0x22c   : > { %v2070_v50 = vpop.permute.xlu1 %2069  ;;  %v1768_v51 = vpop.permute.xlu0 %1767 }
 0x22d   : > { %v1772_v52 = vsel %vm264_vm2, %v1768_v51, %v1770_v48 }
 0x22e   : > { %1780 = vmatprep.subr.mxu0 %v1772_v52 }
 0x230   : > { %v2068_v53 = vpop.permute.xlu1 %2067  ;;  %v1766_v54 = vpop.permute.xlu0 %1765 }
 0x231   : > { %v1771_v56 = vsel %vm264_vm2, %v1766_v54, %v1768_v51  ;;  %v2073_v3 = vsel %vm577_vm4, %v2068_v53, %v2070_v50 }
 0x232   : > { %1781 = vmatpush1.msra.mxu0 %v1771_v56 }
 0x233   : > { %3344 = vmatmul.mubr.msk.f32.vlgmr.msra.gmra.mrb[2].mxu0 %vm1776_vm11, %v3343_v47  ;;  %1924 = vmatprep.subr.mxu0 %v1757_v43 }
 0x234   : > { %v2232_v57 = vpop.permute.xlu1 %2231  ;;  %1925 = vmatpush1.msra.mxu0 %v1756_v45  ;;  %v2072_v58 = vpop.permute.xlu0 %2071  ;;  %1988 = vmatprep.mubr.f32.mxu0 %v3663_v0 }
 0x235   : > { %3465 = vmatpush3.msra.mxu1 %v2072_v58  ;;  %v2074_v62 = vsel %vm577_vm4, %v2070_v50, %v2072_v58 }
 0x236   : > { %2081 = vmatprep.subr.mxu0 %v2074_v62  ;;  %3469 = vmatprep.subr.mxu1 %v3663_v0 }
 0x237   : > { %3467 = vmatmul.mubr.msk.f32.vlgmr.msra.gmra.mrb[22].mxu1 %vm1776_vm11, %v3348_v60 }
 0x238   : > { %3470 = vmatpush3.msra.mxu1 %v2232_v57  ;;  %v2390_v63 = vpop.permute.xlu1 %2389  ;;  %v2230_v1 = vpop.permute.xlu0 %2229  ;;  %3471 = vmatprep.mubr.msk.f32.mxu1 %vm3664_vm0, %v3663_v0 }
 0x239   : > { %3474 = vmatprep.subr.mxu1 %v3663_v0  ;;  %v2234_v5 = vsel %vm741_vm5, %v2230_v1, %v2232_v57 }
 0x23b   : > { %3346 = vmatmul.mubr.msk.f32.vlgmr.msra.gmra.mrb[2].mxu0 %vm1776_vm11, %v1759_v49  ;;  %3472 = vmatmul.mubr.msk.f32.vlgmr.msra.gmra.mrb[24].mxu1 %vm1776_vm11, %v3351_v2 }
 0x23c   : > { %2082 = vmatpush1.msra.mxu0 %v2073_v3  ;;  %v2388_v4 = vpop.permute.xlu1 %2387  ;;  %v2228_v6 = vpop.permute.xlu0 %2227  ;;  %2145 = vmatprep.mubr.f32.mxu0 %v3663_v0 }
 0x23d   : > { %2241 = vmatprep.subr.mxu0 %v2234_v5  ;;  %3476 = vmatprep.mubr.msk.f32.mxu1 %vm3664_vm0, %v3663_v0  ;;  %v2233_v10 = vsel %vm741_vm5, %v2228_v6, %v2230_v1  ;;  %v2393_v17 = vsel %vm905_vm6, %v2388_v4, %v2390_v63 }
 0x240   : > { %v2552_v8 = vpop.permute.xlu1 %2551  ;;  %v2392_v9 = vpop.permute.xlu0 %2391 }
 0x241   : > { %3475 = vmatpush3.msra.mxu1 %v2392_v9  ;;  %v2394_v13 = vsel %vm905_vm6, %v2390_v63, %v2392_v9 }
 0x242   : > { %3479 = vmatprep.subr.mxu1 %v3663_v0  ;;  %3477 = vmatmul.mubr.msk.f32.vlgmr.msra.gmra.mrb[26].mxu1 %vm1776_vm11, %v3354_v7 }
 0x243   : > { %3349 = vmatmul.mubr.msk.f32.vlgmr.msra.gmra.mrb[2].mxu0 %vm1776_vm11, %v3348_v60  ;;  %3480 = vmatpush3.msra.mxu1 %v2552_v8 }
 0x244   : > { %2242 = vmatpush1.msra.mxu0 %v2233_v10  ;;  %v2710_v12 = vpop.permute.xlu1 %2709  ;;  %v2550_v14 = vpop.permute.xlu0 %2549  ;;  %2305 = vmatprep.mubr.f32.mxu0 %v3663_v0 }
 0x245   : > { %2401 = vmatprep.subr.mxu0 %v2394_v13  ;;  %3481 = vmatprep.mubr.msk.f32.mxu1 %vm3664_vm0, %v3663_v0  ;;  %v2554_v19 = vsel %vm1069_vm7, %v2550_v14, %v2552_v8 }
 0x246   : > { %3482 = vmatmul.mubr.msk.f32.vlgmr.msra.gmra.mrb[28].mxu1 %vm1776_vm11, %v3357_v11  ;;  %3484 = vmatprep.subr.mxu1 %v3663_v0 }
 0x247   : > { %3486 = vmatprep.mubr.msk.f32.mxu1 %vm3664_vm0, %v3663_v0 }
 0x248   : > { %v2708_v15 = vpop.permute.xlu1 %2707  ;;  %v2548_v16 = vpop.permute.xlu0 %2547 }
 0x249   : > { %v2553_v24 = vsel %vm1069_vm7, %v2548_v16, %v2550_v14  ;;  %v2713_v29 = vsel %vm1236_vm8, %v2708_v15, %v2710_v12 }
 0x24b   : > { %3352 = vmatmul.mubr.msk.f32.vlgmr.msra.gmra.mrb[2].mxu0 %vm1776_vm11, %v3351_v2 }
 0x24c   : > { %2402 = vmatpush1.msra.mxu0 %v2393_v17  ;;  %v2712_v20 = vpop.permute.xlu0 %2711  ;;  %2465 = vmatprep.mubr.f32.mxu0 %v3663_v0  ;;  %v2872_v21 = vpop.permute.xlu1 %2871 }
 0x24d   : > { %2561 = vmatprep.subr.mxu0 %v2554_v19  ;;  %3485 = vmatpush3.msra.mxu1 %v2712_v20  ;;  %v2714_v25 = vsel %vm1236_vm8, %v2710_v12, %v2712_v20 }
 0x24e   : > { %3489 = vmatprep.subr.mxu1 %v3663_v0  ;;  %3487 = vmatmul.mubr.msk.f32.vlgmr.msra.gmra.mrb[30].mxu1 %vm1776_vm11, %v3360_v18 }
 0x24f   : > { %3490 = vmatpush3.msra.mxu1 %v2872_v21  ;;  %3491 = vmatprep.mubr.msk.f32.mxu1 %vm3664_vm0, %v3663_v0 }
 0x250   : > { %v2870_v23 = vpop.permute.xlu0 %2869  ;;  %3494 = vmatprep.subr.mxu1 %v3663_v0  ;;  %v3030_v31 = vpop.permute.xlu1 %3029 }
 0x251   : > { %v2874_v30 = vsel %vm1403_vm9, %v2870_v23, %v2872_v21 }
 0x252   : > { %3492 = vmatmul.mubr.msk.f32.vlgmr.msra.gmra.mrb[32].mxu1 %vm1776_vm11, %v3363_v22 }
 0x253   : > { %3355 = vmatmul.mubr.msk.f32.vlgmr.msra.gmra.mrb[2].mxu0 %vm1776_vm11, %v3354_v7  ;;  %3496 = vmatprep.mubr.msk.f32.mxu1 %vm3664_vm0, %v3663_v0 }
 0x254   : > { %2562 = vmatpush1.msra.mxu0 %v2553_v24  ;;  %v2868_v26 = vpop.permute.xlu0 %2867  ;;  %2625 = vmatprep.mubr.f32.mxu0 %v3663_v0  ;;  %v3028_v34 = vpop.permute.xlu1 %3027 }
 0x255   : > { %2721 = vmatprep.subr.mxu0 %v2714_v25  ;;  %v2873_v32 = vsel %vm1403_vm9, %v2868_v26, %v2870_v23  ;;  %v3033_v35 = vsel %vm1570_vm10, %v3028_v34, %v3030_v31 }
 0x258   : > { %v3032_v28 = vpop.permute.xlu0 %3031 }
 0x259   : > { %3495 = vmatpush3.msra.mxu1 %v3032_v28  ;;  %v3034_v33 = vsel %vm1570_vm10, %v3030_v31, %v3032_v28 }
 0x25a   : > { %3497 = vmatmul.mubr.msk.f32.vlgmr.msra.gmra.mrb[34].mxu1 %vm1776_vm11, %v3366_v27 }
 0x25b   : > { %3358 = vmatmul.mubr.msk.f32.vlgmr.msra.gmra.mrb[2].mxu0 %vm1776_vm11, %v3357_v11 }
 0x25c   : > { %2722 = vmatpush1.msra.mxu0 %v2713_v29  ;;  %2785 = vmatprep.mubr.f32.mxu0 %v3663_v0 }
 0x25d   : > { %2881 = vmatprep.subr.mxu0 %v2874_v30 }
 0x263   : > { %3361 = vmatmul.mubr.msk.f32.vlgmr.msra.gmra.mrb[2].mxu0 %vm1776_vm11, %v3360_v18 }
 0x264   : > { %2882 = vmatpush1.msra.mxu0 %v2873_v32  ;;  %2945 = vmatprep.mubr.f32.mxu0 %v3663_v0 }
 0x265   : > { %3041 = vmatprep.subr.mxu0 %v3034_v33 }
 0x269   : > { %v3189_v62 = vpop.permute.xlu0 %3188 }
 0x26b   : > { %3364 = vmatmul.mubr.msk.f32.vlgmr.msra.gmra.mrb[2].mxu0 %vm1776_vm11, %v3363_v22 }
 0x26c   : > { %3042 = vmatpush1.msra.mxu0 %v3033_v35  ;;  %3105 = vmatprep.mubr.f32.mxu0 %v3663_v0 }
 0x273   : > { %3367 = vmatmul.mubr.msk.f32.vlgmr.msra.gmra.mrb[2].mxu0 %vm1776_vm11, %v3366_v27 }
 0x2ed   : > { %v1917_v36 = vpop.f32.mrb[18].mxu1 }
 0x2ee   : > { %v3458_v37 = vpop.f32.mrb[19].mxu1 }
 0x2f1   : > { %v2061_v38 = vpop.f32.mrb[20].mxu1 }
 0x2f2   : > { %v2062_v39 = vadd.f32 %v2061_v38, %v1917_v36  ;;  %v3463_v40 = vpop.f32.mrb[21].mxu1 }
 0x30a   : > { %v2218_v41 = vpop.f32.mrb[22].mxu1 }
 0x30b   : > { %v2224_v42 = vadd.f32 %v2218_v41, %v2062_v39  ;;  %v3468_v43 = vpop.f32.mrb[23].mxu1 }
 0x30e   : > { %v2378_v44 = vpop.f32.mrb[24].mxu1 }
 0x30f   : > { %v2384_v45 = vadd.f32 %v2378_v44, %v2224_v42  ;;  %v3473_v46 = vpop.f32.mrb[25].mxu1 }
 0x315   : > { %v2538_v47 = vpop.f32.mrb[26].mxu1 }
 0x316   : > { %v2544_v48 = vadd.f32 %v2538_v47, %v2384_v45  ;;  %v3478_v49 = vpop.f32.mrb[27].mxu1 }
 0x319   : > { %v2698_v50 = vpop.f32.mrb[28].mxu1 }
 0x31a   : > { %v2704_v51 = vadd.f32 %v2698_v50, %v2544_v48  ;;  %v3483_v0 = vpop.f32.mrb[29].mxu1 }
 0x321   : > { %v2858_v52 = vpop.f32.mrb[30].mxu1 }
 0x322   : > { %v2864_v53 = vadd.f32 %v2858_v52, %v2704_v51  ;;  %v3488_v54 = vpop.f32.mrb[31].mxu1 }
 0x325   : > { %v3018_v56 = vpop.f32.mrb[32].mxu1 }
 0x326   : > { %v3024_v57 = vadd.f32 %v3018_v56, %v2864_v53  ;;  %v3493_v58 = vpop.f32.mrb[33].mxu1 }
 0x32d   : > { %v3178_v60 = vpop.f32.mrb[34].mxu1 }
 0x32e   : > { %v3184_v63 = vadd.f32 %v3178_v60, %v3024_v57  ;;  %v3498_v1 = vpop.f32.mrb[35].mxu1 }
 0x330   : > { %v3193_v2 = vadd.f32 %v3189_v62, %v3184_v63 }
 0x332   : > { %v3199_v3 = vadd.f32 %v3193_v2, %v3924_v55 }
 0x334   : > { %3593 = vtanh.f32 %v3199_v3 }
 0x33e   : > { %v3594_v4 = vpop.eup %3593 }
 0x33f   : > { %3209 = vst.msk [vmem:[%s244_s26 + $0x8] sm:$0xf] %vm3208_vm12, %v3594_v4 }
 0x346   : > { %v3107_v5 = vpop.f32.mrb[2].mxu0 }
 0x347   : > { %v3191_v6 = vadd.f32 %v3189_v62, %v3107_v5  ;;  %v3109_v7 = vpop.f32.mrb[3].mxu0 }
 0x348   : > { %v3192_v8 = vadd.f32 %v3189_v62, %v3109_v7 }
 0x349   : > { %v3197_v9 = vadd.f32 %v3191_v6, %v3952_v61 }
 0x34a   : > { %v3198_v10 = vadd.f32 %v3192_v8, %v3944_v59 }
 0x34b   : > { %3595 = vtanh.f32 %v3197_v9 }
 0x34c   : > { %3597 = vtanh.f32 %v3198_v10 }
 0x355   : > { %v3596_v55 = vpop.eup %3595 }
 0x356   : > { %v3598_v11 = vpop.eup %3597 }
 0x357   : > { %v3205_v12 = vcombine.low %v3596_v55, %v3598_v11 }
 0x359   : > { %3207 = vst [vmem:[%s244_s26] sm:$0xff] %v3205_v12 }
 0x35a   : > { %3612 = shalt.err (!%p3609_p3)
}
 0x35b   : > { %s3613_s16 = scalar_lea.hbm %s4091_s12, 192  ;;  %s3617_s19 = scalar_lea.hbm %s4139_s6, 384 }
 0x35c   : > { %p3614_p4 = scmp.ne.s32.totalorder %s4091_s12, %s3613_s16  ;;  %p3618_p9 = scmp.lt.u32.totalorder %s4091_s12, %s4139_s6 }
 0x35d   : > { %p3619_p10 = scmp.lt.u32.totalorder %s3617_s19, %s3613_s16  ;;  %p3621_p12 = scmp.lt.u32.totalorder %s3613_s16, %s4091_s12 }
 0x35e   : > { %p3615_p7 = pnand %p3614_p4, %p3748_p5 }
 0x35f   : > { %p3620_p11 = por %p3619_p10, %p3618_p9 }
 0x360   : > { %p3616_p8 = pneg %p3615_p7 }
 0x361   : > { %p3622_p13 = por %p3621_p12, %p3620_p11 }
 0x363   : > { %p3623_p0 = pnand %p3622_p13, %p3616_p8 }
 0x365   : > { %3626 = shalt.err (!%p3623_p0)
}
 0x366   : > { %3533 = dma.vmem_to_hbm [thread:$0]  (%p3748_p5), %s4093_s9, 192, %s4091_s12, %s3211_s13  }
 0x367 PF: > { %p3539_p1 = scmp.ge.s32.totalorder %s3661_s24, 2  ;;  %s3237_s29 = sand.u32 1, %s3649_s21  }
 0x368   : > { %s3238_s10 = scalar_lea.sflag [#allocation3], %s3237_s29 }
 0x369   : > { %p3536_p2 = pnand %p3539_p1, %p3752_p6 }
 0x36b   : > { %3644 = dma.done.wait (!%p3536_p2), %s3238_s10, 192  }
 0x36c   : > { %3646 = vsyncadd (!%p3536_p2), %s3238_s10, 4294967104  ;;  %p16_p3 = scmp.ge.s32.totalorder %s3735_s27, 4   ;;  %s4142_s21 = smov %s3653_s22 }
 0x36d   : > { %s4143_s22 = smov %s3657_s23  ;;  %s4144_s23 = smov %s3746_s30 }
 0x36e   : > { %s4145_s24 = smov %s3735_s27  ;;  %18 = sbr.rel (!%p16_p3) target bundleno = 3 (0x3), region = 95 }
 0x375   :  { %3243 = vsyncpa [#allocation3], 1 }
 0x376   :  { %3245 = vsyncpa [#allocation3 + $0x1], 1 }

</bundles_post_ra>
